<compile_context>
chip_gen: v5e
topology: v5e:2x2
jax: 0.10.0
libtpu: 0.0.40
codegen_flags: <defaults>
</compile_context>

<pallas_src>
import jax
import jax.numpy as jnp
from jax.experimental import pallas as pl
from jax.experimental.pallas import tpu as pltpu

NUM_HIDDEN = 64
NUM_CLASS = 3


def _round_up(x, m):
    return ((x + m - 1) // m) * m


# ---------------------------------------------------------------------------
# Kernel
# ---------------------------------------------------------------------------
def _classifier_kernel(title_ref, article_ref,
                       w1_ref, b1_ref,
                       w2_ref, b2_ref,
                       w3a_ref, w3b_ref, b3_ref,
                       out_ref):
    # Activations arrive as f32 blocks (native dtype, single HBM pass) and are
    # cast to bf16 in-vreg right before the MXU; accumulation stays f32.
    t = title_ref[...].astype(jnp.bfloat16)
    a = article_ref[...].astype(jnp.bfloat16)

    h1 = jnp.dot(t, w1_ref[...], preferred_element_type=jnp.float32) + b1_ref[...]
    h2 = jnp.dot(a, w2_ref[...], preferred_element_type=jnp.float32) + b2_ref[...]

    # lin3 on the (virtual) concat [h1, h2]:
    #   concat([h1, h2]) @ W3^T == h1 @ W3[:, :64]^T + h2 @ W3[:, 64:]^T
    logits = (jnp.dot(h1, w3a_ref[...], preferred_element_type=jnp.float32)
              + jnp.dot(h2, w3b_ref[...], preferred_element_type=jnp.float32)
              + b3_ref[...])

    # Numerically stable softmax over dim=1 (classes). approx reciprocal goes
    # to the otherwise-idle EUP slot.
    m = jnp.max(logits, axis=1, keepdims=True)
    e = jnp.exp(logits - m)
    inv = pl.reciprocal(jnp.sum(e, axis=1, keepdims=True), approx=True)
    out_ref[...] = (e * inv).astype(out_ref.dtype)


# ---------------------------------------------------------------------------
# Device / tiling helpers (all run at trace time; shapes are static)
# ---------------------------------------------------------------------------
def _device_info():
    """(vmem_capacity_bytes, multi_tensorcore_per_chip)."""
    vmem = 64 << 20          # conservative default (v7x per-TC VMEM)
    multi_core = False
    try:
        vmem = int(pltpu.get_tpu_info().vmem_capacity_bytes)
    except Exception:
        pass
    try:
        kind = jax.devices()[0].device_kind.lower()
        multi_core = "v7" in kind            # 2 TensorCores per chip
    except Exception:
        pass
    return vmem, multi_core


def _choose_tile_b(B, num_dim, vmem_capacity, multi_core):
    """Batch tile: f32 input streams (2 streams x 2 buffers) under ~1/3 of VMEM,
    capped at 1024 rows; on multi-TC chips force >= 2 grid steps."""
    per_row = 2 * 2 * 4 * _round_up(num_dim, 128)        # f32, padded lane dim
    budget = min(vmem_capacity // 3, 24 << 20)
    tb = budget // per_row
    tb = max(16, min(tb, 1024))
    tb = (tb // 16) * 16
    if multi_core and B > 32:
        # Guarantee >= 2 grid steps so both TensorCores get work.
        tb = min(tb, _round_up(pl.cdiv(B, 2), 16))
    if tb >= B:                                           # single block covers batch
        tb = _round_up(max(B, 8), 8)
    return int(tb)


def _vmem_limit_bytes(tile_b, num_dim, vmem_capacity):
    """Scoped-VMEM request: double-buffered f32 inputs, single-buffered weights,
    padded to (8,128) tiles, with headroom; capped generation-aware."""
    def padded(r, c, itemsize):
        return _round_up(r, 8) * _round_up(c, 128) * itemsize

    inputs = 2 * 2 * padded(tile_b, num_dim, 4)                    # f32 acts x2 bufs
    outputs = 2 * padded(tile_b, NUM_CLASS, 4)                     # f32 probs
    weights = (2 * (padded(num_dim, NUM_HIDDEN, 2) + padded(1, NUM_HIDDEN, 4))
               + 2 * padded(NUM_HIDDEN, NUM_CLASS, 4)
               + padded(1, NUM_CLASS, 4))                          # single-buffered
    total = inputs + outputs + weights + (4 << 20)                 # headroom
    cap = min(40 << 20, (vmem_capacity * 6) // 10)
    return int(min(max(total, 16 << 20), cap))


# ---------------------------------------------------------------------------
# Parameter prep (one-time, out of the per-call path)
# ---------------------------------------------------------------------------
def prepare_params(params):
    """Pre-transpose to (in, out), split lin3 for the fused concat, cast lin1/lin2
    weights to bf16, reshape biases to 2-D. Call once, reuse every forward."""
    w1, b1, w2, b2, w3, b3 = (params["w1"], params["b1"], params["w2"],
                              params["b2"], params["w3"], params["b3"])
    return {
        "w1_t": w1.T.astype(jnp.bfloat16),                   # (num_dim, 64)
        "w2_t": w2.T.astype(jnp.bfloat16),                   # (num_dim, 64)
        "b1": b1.reshape(1, -1).astype(jnp.float32),          # (1, 64)
        "b2": b2.reshape(1, -1).astype(jnp.float32),          # (1, 64)
        "w3a": w3[:, :NUM_HIDDEN].T.astype(jnp.float32),      # (64, 3) acts on h1
        "w3b": w3[:, NUM_HIDDEN:].T.astype(jnp.float32),      # (64, 3) acts on h2
        "b3": b3.reshape(1, -1).astype(jnp.float32),          # (1, 3)
    }


# ---------------------------------------------------------------------------
# Forward wrapper
# ---------------------------------------------------------------------------
@jax.jit
def transfer_classifier_forward(title, article, prep):
    """title, article: (B, num_dim) float. Returns (B, 3) softmax probs (f32)."""
    B, num_dim = title.shape
    vmem_cap, multi_core = _device_info()
    tile_b = _choose_tile_b(B, num_dim, vmem_cap, multi_core)
    grid = (pl.cdiv(B, tile_b),)

    # Native-dtype activation stream (no wrapper-side cast).
    title = title.astype(jnp.float32)
    article = article.astype(jnp.float32)

    act_spec = pl.BlockSpec((tile_b, num_dim), lambda i: (i, 0))

    def resident(shape):
        # Constant index_map -> stays VMEM-resident; single-buffered to save VMEM.
        return pl.BlockSpec(shape, lambda i: (0, 0), pipeline_mode=pl.Buffered(1))

    flops = 4 * B * num_dim * NUM_HIDDEN + 4 * B * NUM_HIDDEN * NUM_CLASS
    bytes_accessed = (2 * B * num_dim * 4                 # f32 activations
                      + B * NUM_CLASS * 4                 # f32 output
                      + sum(int(v.size) * v.dtype.itemsize for v in prep.values()))

    return pl.pallas_call(
        _classifier_kernel,
        out_shape=jax.ShapeDtypeStruct((B, NUM_CLASS), jnp.float32),
        grid=grid,
        in_specs=[
            act_spec,                                     # title  (TILE_B, num_dim)
            act_spec,                                     # article
            resident((num_dim, NUM_HIDDEN)),              # w1_t
            resident((1, NUM_HIDDEN)),                    # b1
            resident((num_dim, NUM_HIDDEN)),              # w2_t
            resident((1, NUM_HIDDEN)),                    # b2
            resident((NUM_HIDDEN, NUM_CLASS)),            # w3a
            resident((NUM_HIDDEN, NUM_CLASS)),            # w3b
            resident((1, NUM_CLASS)),                     # b3
        ],
        out_specs=pl.BlockSpec((tile_b, NUM_CLASS), lambda i: (i, 0)),
        compiler_params=pltpu.CompilerParams(
            dimension_semantics=("parallel",),            # megacore batch split
            vmem_limit_bytes=_vmem_limit_bytes(tile_b, num_dim, vmem_cap)),
        cost_estimate=pl.CostEstimate(
            flops=flops,
            transcendentals=B * NUM_CLASS,
            bytes_accessed=bytes_accessed),
    )(title, article,
      prep["w1_t"], prep["b1"], prep["w2_t"], prep["b2"],
      prep["w3a"], prep["w3b"], prep["b3"])


# ---------------------------------------------------------------------------
# Init + reference
# ---------------------------------------------------------------------------
def init_params(key, num_dim, num_class=3):
    """PyTorch-style uniform(-1/sqrt(fan_in), 1/sqrt(fan_in)) init."""
    ks = jax.random.split(key, 6)

    def lin(kw, kb, fan_in, fan_out):
        bound = 1.0 / jnp.sqrt(jnp.float32(fan_in))
        w = jax.random.uniform(kw, (fan_out, fan_in), jnp.float32, -bound, bound)
        b = jax.random.uniform(kb, (fan_out,), jnp.float32, -bound, bound)
        return w, b

    w1, b1 = lin(ks[0], ks[1], num_dim, NUM_HIDDEN)
    w2, b2 = lin(ks[2], ks[3], num_dim, NUM_HIDDEN)
    w3, b3 = lin(ks[4], ks[5], NUM_HIDDEN * 2, num_class)
    return {"w1": w1, "b1": b1, "w2": w2, "b2": b2, "w3": w3, "b3": b3}


def _reference(title, article, p):
    h1 = title @ p["w1"].T + p["b1"]
    h2 = article @ p["w2"].T + p["b2"]
    x = jnp.concatenate([h1, h2], axis=1) @ p["w3"].T + p["b3"]
    return jax.nn.softmax(x, axis=1)


if __name__ == "__main__":
    key = jax.random.PRNGKey(0)
    k_t, k_a, k_p, k_t2, k_a2 = jax.random.split(key, 5)

    num_dim = 32
    params = init_params(k_p, num_dim)
    prep = prepare_params(params)

    # Main small test (B multiple of 8).
    B = 8
    title = jax.random.normal(k_t, (B, num_dim), jnp.float32)
    article = jax.random.normal(k_a, (B, num_dim), jnp.float32)

    out = jax.block_until_ready(transfer_classifier_forward(title, article, prep))
    ref = _reference(title, article, params)
    assert out.shape == (B, NUM_CLASS)
    # bf16 weight path + approx reciprocal -> loosened tolerances vs f32 reference.
    assert jnp.allclose(out, ref, atol=5e-2, rtol=5e-2)
    assert jnp.allclose(jnp.sum(out, axis=1), 1.0, atol=1e-2)

    # Ragged-batch test: exercises pl.cdiv grid + masked writeback of the
    # partial output block (and, on v7x, the 2-step grid / megacore path).
    B2 = 52
    title2 = jax.random.normal(k_t2, (B2, num_dim), jnp.float32)
    article2 = jax.random.normal(k_a2, (B2, num_dim), jnp.float32)
    out2 = jax.block_until_ready(transfer_classifier_forward(title2, article2, prep))
    ref2 = _reference(title2, article2, params)
    assert out2.shape == (B2, NUM_CLASS)
    assert jnp.allclose(out2, ref2, atol=5e-2, rtol=5e-2)
    assert jnp.allclose(jnp.sum(out2, axis=1), 1.0, atol=1e-2)

    print("KERNEL_OK")
</pallas_src>

<mosaic_0001>
module attributes {stable_mosaic.version = 11 : i64} {
  func.func @_classifier_kernel(%arg0: i32, %arg1: memref<8x32xf32, #tpu.memory_space<vmem>>, %arg2: memref<8x32xf32, #tpu.memory_space<vmem>>, %arg3: memref<32x64xbf16, #tpu.memory_space<vmem>>, %arg4: memref<1x64xf32, #tpu.memory_space<vmem>>, %arg5: memref<32x64xbf16, #tpu.memory_space<vmem>>, %arg6: memref<1x64xf32, #tpu.memory_space<vmem>>, %arg7: memref<64x3xf32, #tpu.memory_space<vmem>>, %arg8: memref<64x3xf32, #tpu.memory_space<vmem>>, %arg9: memref<1x3xf32, #tpu.memory_space<vmem>>, %arg10: memref<8x3xf32, #tpu.memory_space<vmem>>) attributes {dimension_semantics = [#tpu.dimension_semantics<parallel>], iteration_bounds = array<i64: 1>, scalar_prefetch = 0 : i64, scratch_operands = 0 : i64, tpu.core_type = #tpu.core_type<tc>, window_params = [{transform_indices = @transform_0, window_bounds = array<i64: 8, 32>}, {transform_indices = @transform_1, window_bounds = array<i64: 8, 32>}, {pipeline_mode = #tpu.pipeline_mode<synchronous>, transform_indices = @transform_2, window_bounds = array<i64: 32, 64>}, {pipeline_mode = #tpu.pipeline_mode<synchronous>, transform_indices = @transform_3, window_bounds = array<i64: 1, 64>}, {pipeline_mode = #tpu.pipeline_mode<synchronous>, transform_indices = @transform_4, window_bounds = array<i64: 32, 64>}, {pipeline_mode = #tpu.pipeline_mode<synchronous>, transform_indices = @transform_5, window_bounds = array<i64: 1, 64>}, {pipeline_mode = #tpu.pipeline_mode<synchronous>, transform_indices = @transform_6, window_bounds = array<i64: 64, 3>}, {pipeline_mode = #tpu.pipeline_mode<synchronous>, transform_indices = @transform_7, window_bounds = array<i64: 64, 3>}, {pipeline_mode = #tpu.pipeline_mode<synchronous>, transform_indices = @transform_8, window_bounds = array<i64: 1, 3>}, {transform_indices = @transform_9, window_bounds = array<i64: 8, 3>}]} {
    %c0 = arith.constant 0 : index
    %c0_0 = arith.constant 0 : index
    %0 = vector.load %arg1[%c0, %c0_0] : memref<8x32xf32, #tpu.memory_space<vmem>>, vector<8x32xf32>
    %1 = arith.truncf %0 : vector<8x32xf32> to vector<8x32xbf16>
    %c0_1 = arith.constant 0 : index
    %c0_2 = arith.constant 0 : index
    %2 = vector.load %arg2[%c0_1, %c0_2] : memref<8x32xf32, #tpu.memory_space<vmem>>, vector<8x32xf32>
    %3 = arith.truncf %2 : vector<8x32xf32> to vector<8x32xbf16>
    %c0_3 = arith.constant 0 : index
    %c0_4 = arith.constant 0 : index
    %4 = vector.load %arg3[%c0_3, %c0_4] : memref<32x64xbf16, #tpu.memory_space<vmem>>, vector<32x64xbf16>
    %cst = arith.constant dense<0.000000e+00> : vector<8x64xf32>
    %5 = tpu.matmul %1, %4, %cst {dimension_numbers = #tpu.dot_dimension_numbers<[1], [0], [0], [1], [0, 0, 1, 1], [], []>} : vector<8x32xbf16>, vector<32x64xbf16>, vector<8x64xf32> -> vector<8x64xf32>
    %c0_5 = arith.constant 0 : index
    %c0_6 = arith.constant 0 : index
    %6 = vector.load %arg4[%c0_5, %c0_6] : memref<1x64xf32, #tpu.memory_space<vmem>>, vector<1x64xf32>
    %7 = vector.broadcast %6 : vector<1x64xf32> to vector<8x64xf32>
    %8 = arith.addf %5, %7 : vector<8x64xf32>
    %c0_7 = arith.constant 0 : index
    %c0_8 = arith.constant 0 : index
    %9 = vector.load %arg5[%c0_7, %c0_8] : memref<32x64xbf16, #tpu.memory_space<vmem>>, vector<32x64xbf16>
    %cst_9 = arith.constant dense<0.000000e+00> : vector<8x64xf32>
    %10 = tpu.matmul %3, %9, %cst_9 {dimension_numbers = #tpu.dot_dimension_numbers<[1], [0], [0], [1], [0, 0, 1, 1], [], []>} : vector<8x32xbf16>, vector<32x64xbf16>, vector<8x64xf32> -> vector<8x64xf32>
    %c0_10 = arith.constant 0 : index
    %c0_11 = arith.constant 0 : index
    %11 = vector.load %arg6[%c0_10, %c0_11] : memref<1x64xf32, #tpu.memory_space<vmem>>, vector<1x64xf32>
    %12 = vector.broadcast %11 : vector<1x64xf32> to vector<8x64xf32>
    %13 = arith.addf %10, %12 : vector<8x64xf32>
    %c0_12 = arith.constant 0 : index
    %c0_13 = arith.constant 0 : index
    %14 = vector.load %arg7[%c0_12, %c0_13] : memref<64x3xf32, #tpu.memory_space<vmem>>, vector<64x3xf32>
    %cst_14 = arith.constant dense<0.000000e+00> : vector<8x3xf32>
    %15 = tpu.matmul %8, %14, %cst_14 {dimension_numbers = #tpu.dot_dimension_numbers<[1], [0], [0], [1], [0, 0, 1, 1], [], []>} : vector<8x64xf32>, vector<64x3xf32>, vector<8x3xf32> -> vector<8x3xf32>
    %c0_15 = arith.constant 0 : index
    %c0_16 = arith.constant 0 : index
    %16 = vector.load %arg8[%c0_15, %c0_16] : memref<64x3xf32, #tpu.memory_space<vmem>>, vector<64x3xf32>
    %cst_17 = arith.constant dense<0.000000e+00> : vector<8x3xf32>
    %17 = tpu.matmul %13, %16, %cst_17 {dimension_numbers = #tpu.dot_dimension_numbers<[1], [0], [0], [1], [0, 0, 1, 1], [], []>} : vector<8x64xf32>, vector<64x3xf32>, vector<8x3xf32> -> vector<8x3xf32>
    %18 = arith.addf %15, %17 : vector<8x3xf32>
    %c0_18 = arith.constant 0 : index
    %c0_19 = arith.constant 0 : index
    %19 = vector.load %arg9[%c0_18, %c0_19] : memref<1x3xf32, #tpu.memory_space<vmem>>, vector<1x3xf32>
    %20 = vector.broadcast %19 : vector<1x3xf32> to vector<8x3xf32>
    %21 = arith.addf %18, %20 : vector<8x3xf32>
    %cst_20 = arith.constant dense<0xFF800000> : vector<8xf32>
    %22 = vector.multi_reduction <maximumf>, %21, %cst_20 [1] : vector<8x3xf32> to vector<8xf32>
    %23 = vector.shape_cast %22 : vector<8xf32> to vector<8x1xf32>
    %24 = vector.broadcast %23 : vector<8x1xf32> to vector<8x3xf32>
    %25 = arith.subf %21, %24 : vector<8x3xf32>
    %26 = math.exp %25 : vector<8x3xf32>
    %cst_21 = arith.constant dense<0.000000e+00> : vector<8xf32>
    %27 = vector.multi_reduction <add>, %26, %cst_21 [1] : vector<8x3xf32> to vector<8xf32>
    %28 = vector.shape_cast %27 : vector<8xf32> to vector<8x1xf32>
    %29 = tpu.reciprocal %28 {approx = true} : vector<8x1xf32> -> vector<8x1xf32>
    %30 = vector.broadcast %29 : vector<8x1xf32> to vector<8x3xf32>
    %31 = arith.mulf %26, %30 : vector<8x3xf32>
    %c0_22 = arith.constant 0 : index
    %c0_23 = arith.constant 0 : index
    %32 = vector.load %arg10[%c0_22, %c0_23] : memref<8x3xf32, #tpu.memory_space<vmem>>, vector<8x3xf32>
    tpu.vector_store %arg10[%c0_22, %c0_23], %31 {strides = array<i32>} : memref<8x3xf32, #tpu.memory_space<vmem>>, vector<8x3xf32>,
    return
  }
  func.func @transform_0(%arg0: i32) -> (i32, i32) {
    %c0_i32 = arith.constant 0 : i32
    %c0_i32_0 = arith.constant 0 : i32
    return %arg0, %c0_i32 : i32, i32
  }
  func.func @transform_1(%arg0: i32) -> (i32, i32) {
    %c0_i32 = arith.constant 0 : i32
    %c0_i32_0 = arith.constant 0 : i32
    return %arg0, %c0_i32 : i32, i32
  }
  func.func @transform_2(%arg0: i32) -> (i32, i32) {
    %c0_i32 = arith.constant 0 : i32
    %c0_i32_0 = arith.constant 0 : i32
    %c0_i32_1 = arith.constant 0 : i32
    return %c0_i32, %c0_i32_0 : i32, i32
  }
  func.func @transform_3(%arg0: i32) -> (i32, i32) {
    %c0_i32 = arith.constant 0 : i32
    %c0_i32_0 = arith.constant 0 : i32
    %c0_i32_1 = arith.constant 0 : i32
    return %c0_i32, %c0_i32_0 : i32, i32
  }
  func.func @transform_4(%arg0: i32) -> (i32, i32) {
    %c0_i32 = arith.constant 0 : i32
    %c0_i32_0 = arith.constant 0 : i32
    %c0_i32_1 = arith.constant 0 : i32
    return %c0_i32, %c0_i32_0 : i32, i32
  }
  func.func @transform_5(%arg0: i32) -> (i32, i32) {
    %c0_i32 = arith.constant 0 : i32
    %c0_i32_0 = arith.constant 0 : i32
    %c0_i32_1 = arith.constant 0 : i32
    return %c0_i32, %c0_i32_0 : i32, i32
  }
  func.func @transform_6(%arg0: i32) -> (i32, i32) {
    %c0_i32 = arith.constant 0 : i32
    %c0_i32_0 = arith.constant 0 : i32
    %c0_i32_1 = arith.constant 0 : i32
    return %c0_i32, %c0_i32_0 : i32, i32
  }
  func.func @transform_7(%arg0: i32) -> (i32, i32) {
    %c0_i32 = arith.constant 0 : i32
    %c0_i32_0 = arith.constant 0 : i32
    %c0_i32_1 = arith.constant 0 : i32
    return %c0_i32, %c0_i32_0 : i32, i32
  }
  func.func @transform_8(%arg0: i32) -> (i32, i32) {
    %c0_i32 = arith.constant 0 : i32
    %c0_i32_0 = arith.constant 0 : i32
    %c0_i32_1 = arith.constant 0 : i32
    return %c0_i32, %c0_i32_0 : i32, i32
  }
  func.func @transform_9(%arg0: i32) -> (i32, i32) {
    %c0_i32 = arith.constant 0 : i32
    %c0_i32_0 = arith.constant 0 : i32
    return %arg0, %c0_i32 : i32, i32
  }
}

</mosaic_0001>

<bundles_post_ra>
// kernel: transfer_classifier_forward.1
= control target key start
LH: loop header
LB: loop body
LE: loop exit
PB: predicated region body
PF: predicated region fallthrough
CT: control target
= control target key end

     0   :  { %vm57_vm0 = vcmask 261120   ;;  %vm126_vm1 = vcmask 523264   ;;  %vm178_vm2 = vcmask 23552   ;;  %s357_s2 = inlined_call_operand.vmem [shape: bf16[32,64], index: 2, kind: input, shape index: {}]   ;;  %s358_s4 = inlined_call_operand.vmem [shape: bf16[32,64], index: 4, kind: input, shape index: {}]   ;;  %s359_s0 = inlined_call_operand.vmem [shape: f32[8,32], index: 0, kind: input, shape index: {}]   ;;  %s360_s1 = inlined_call_operand.vmem [shape: f32[8,32], index: 1, kind: input, shape index: {}]   ;;  %s361_s7 = inlined_call_operand.vmem [shape: f32[64,3], index: 7, kind: input, shape index: {}]   ;;  %s362_s6 = inlined_call_operand.vmem [shape: f32[64,3], index: 6, kind: input, shape index: {}]   ;;  %s363_s3 = inlined_call_operand.vmem [shape: f32[1,64], index: 3, kind: input, shape index: {}]   ;;  %s364_s5 = inlined_call_operand.vmem [shape: f32[1,64], index: 5, kind: input, shape index: {}]   ;;  %s365_s8 = inlined_call_operand.vmem [shape: f32[1,3], index: 8, kind: input, shape index: {}]   ;;  %s366_s9 = inlined_call_operand.vmem [shape: f32[8,3], index: 9, kind: output, shape index: {}]  }
   0x1   :  { %v216_v0 = vld [vmem:[%s357_s2 + $0x8] sm:$0xff]  ;;  %v215_v2 = vld [vmem:[%s357_s2] sm:$0xff]  ;;  %v125_v6 = vld [vmem:[%s361_s7 + $0x38] sm:$0xff] }
   0x2   :  { %v218_v1 = vld [vmem:[%s358_s4 + $0x8] sm:$0xff]  ;;  %v217_v3 = vld [vmem:[%s358_s4] sm:$0xff]  ;;  %67 = vmatpush.bf16.msra.mxu0 %v216_v0  ;;  %v117_v7 = vld [vmem:[%s362_s6 + $0x38] sm:$0xff]  ;;  %138 = vmatpush.msra.mxu2 %v125_v6 }
   0x3   :  { %v33_v4 = vld [vmem:[%s359_s0] sm:$0xff]  ;;  %103 = vmatpush.bf16.msra.mxu1 %v218_v1  ;;  %v124_v8 = vld [vmem:[%s361_s7 + $0x30] sm:$0xff]  ;;  %161 = vmatpush.msra.mxu3 %v117_v7  ;;  %v123_v10 = vld [vmem:[%s361_s7 + $0x28] sm:$0xff] }
   0x4   :  { %v35_v5 = vld [vmem:[%s360_s1] sm:$0xff]  ;;  %v116_v9 = vld [vmem:[%s362_s6 + $0x30] sm:$0xff]  ;;  %v115_v11 = vld [vmem:[%s362_s6 + $0x28] sm:$0xff]  ;;  %v34_v12 = vpack.c.bf16 %v33_v4, %v33_v4  ;;  %139 = vmatpush.msra.mxu2 %v124_v8 }
   0x5   :  { %v36_v13 = vpack.c.bf16 %v35_v5, %v35_v5  ;;  %162 = vmatpush.msra.mxu3 %v116_v9  ;;  %v122_v14 = vld [vmem:[%s361_s7 + $0x20] sm:$0xff]  ;;  %v121_v16 = vld [vmem:[%s361_s7 + $0x18] sm:$0xff]  ;;  %v120_v18 = vld [vmem:[%s361_s7 + $0x10] sm:$0xff] }
   0x6   :  { %68 = vmatpush.bf16.msra.mxu0 %v215_v2  ;;  %140 = vmatpush.msra.mxu2 %v123_v10  ;;  %v114_v15 = vld [vmem:[%s362_s6 + $0x20] sm:$0xff]  ;;  %v113_v17 = vld [vmem:[%s362_s6 + $0x18] sm:$0xff]  ;;  %v112_v19 = vld [vmem:[%s362_s6 + $0x10] sm:$0xff] }
   0x7   :  { %104 = vmatpush.bf16.msra.mxu1 %v217_v3  ;;  %163 = vmatpush.msra.mxu3 %v115_v11  ;;  %v119_v20 = vld [vmem:[%s361_s7 + $0x8] sm:$0xff]  ;;  %v118_v22 = vld [vmem:[%s361_s7] sm:$0xff] }
   0x8   :  { %141 = vmatpush.msra.mxu2 %v122_v14  ;;  %v111_v21 = vld [vmem:[%s362_s6 + $0x8] sm:$0xff]  ;;  %v110_v23 = vld [vmem:[%s362_s6] sm:$0xff] }
   0x9   :  { %203 = vmatmul.msk.bf16.vlgmr.msra.gmra.mxu0 %vm57_vm0, %v34_v12  ;;  %164 = vmatpush.msra.mxu3 %v114_v15  ;;  %v219_v24 = vld [vmem:[%s363_s3] ss:$0 sm:$0xff] }
   0xa   :  { %212 = vmatmul.msk.bf16.vlgmr.msra.gmra.mxu1 %vm57_vm0, %v36_v13  ;;  %142 = vmatpush.msra.mxu2 %v121_v16  ;;  %v220_v25 = vld [vmem:[%s364_s5] ss:$0 sm:$0xff] }
   0xb   :  { %165 = vmatpush.msra.mxu3 %v113_v17  ;;  %v221_v32 = vld [vmem:[%s365_s8] ss:$0 sm:$0xff] }
   0xc   :  { %143 = vmatpush.msra.mxu2 %v120_v18 }
   0xd   :  { %166 = vmatpush.msra.mxu3 %v112_v19 }
   0xe   :  { %144 = vmatpush.msra.mxu2 %v119_v20 }
   0xf   :  { %167 = vmatpush.msra.mxu3 %v111_v21 }
  0x10   :  { %145 = vmatpush.msra.mxu2 %v118_v22 }
  0x11   :  { %168 = vmatpush.msra.mxu3 %v110_v23 }
  0x86   :  { %v70_v26 = vpop.f32.mrf.mxu0 }
  0x87   :  { %v106_v27 = vpop.f32.mrf.mxu1  ;;  %v71_v28 = vadd.f32 %v219_v24, %v70_v26 }
  0x88   :  { %v107_v29 = vadd.f32 %v220_v25, %v106_v27 }
  0x89   :  { %214 = vmatmul.msk.f32.vlgmr.msra.gmra.mxu3 %vm126_vm1, %v71_v28 }
  0x8a   :  { %213 = vmatmul.msk.f32.vlgmr.msra.gmra.mxu2 %vm126_vm1, %v107_v29 }
  0x8e   :  { %v72_v30 = vpop.f32.mrf.mxu0 }
  0x8f   :  { %v108_v31 = vpop.f32.mrf.mxu1 }
 0x10c   :  { %v170_v34 = vpop.f32.mrf.mxu3 }
 0x10d   :  { %v147_v33 = vpop.f32.mrf.mxu2 }
 0x10e   :  { %v171_v35 = vadd.f32 %v170_v34, %v147_v33 }
 0x110   :  { %v177_v36 = vadd.f32 %v221_v32, %v171_v35 }
 0x112   :  { %v179_v37 = vsel %vm178_vm2, %v177_v36, -inf }
 0x113   :  { %180 = vmax.xlane.f32.xlu0 %v179_v37 }
 0x186   :  { %v181_v38 = vpop.xlane.xlu0 %180 }
 0x187   :  { %v182_v39 = vsub.f32 %v177_v36, %v181_v38 }
 0x189   :  { %v183_v40 = vmul.f32 1.442695, %v182_v39 }
 0x18b   :  { %222 = vpow2.f32 %v183_v40 }
 0x191   :  { %v223_v41 = vpop.eup %222 }
 0x192   :  { %v185_v42 = vsel %vm178_vm2, %v223_v41, 0.0 }
 0x193   :  { %186 = vadd.xlane.f32.xlu0 %v185_v42 }
 0x206   :  { %v187_v43 = vpop.xlane.xlu0 %186 }
 0x207   :  { %224 = vrcp.f32 %v187_v43 }
 0x20d   :  { %v225_v44 = vpop.eup %224 }
 0x20e   :  { %v189_v45 = vmul.f32 %v225_v44, %v223_v41 }
 0x210   :  { %190 = vst.msk [vmem:[%s366_s9] sm:$0xff] %vm178_vm2, %v189_v45 }

</bundles_post_ra>
